<compile_context>
chip_gen: v7x
topology: tpu7x:2x2x1
jax: 0.10.0
libtpu: 0.0.40
codegen_flags: <defaults>
</compile_context>

<pallas_src>
import functools

import jax
import jax.numpy as jnp
from jax.experimental import pallas as pl
from jax.experimental.pallas import tpu as pltpu


# ----------------------------------------------------------------------------
# Kernels
# ----------------------------------------------------------------------------
def _att_single_pass_kernel(x_ref, w1_ref, b1_ref, w2_ref, b2_ref, o_ref, *,
                            hw_true):
    """Whole-spatial block per grid step; x_ref is (TB, C, HWp)."""
    x = x_ref[...]                                      # (TB, C, HWp) f32
    tb, c, hwp = x.shape
    inv_hw = 1.0 / float(hw_true)

    # Per-(batch, channel) mean over the true spatial extent (zero padding on
    # the lane axis does not change the sum).
    s1 = jnp.sum(x, axis=2)                             # (TB, C)
    mean = s1 * inv_hw

    # Exact (two-pass) biased variance: x is resident in VMEM, so the second
    # sweep costs no extra HBM traffic and avoids E[x^2]-mean^2 cancellation.
    d = x - mean[:, :, None]
    if hwp != hw_true:                                  # mask padded lanes
        lane = jax.lax.broadcasted_iota(jnp.int32, (tb, c, hwp), 2)
        d = jnp.where(lane < hw_true, d, 0.0)
    var = jnp.sum(d * d, axis=2) * inv_hw               # (TB, C)
    std = jnp.sqrt(var)

    # Merged avg/std attention MLP (block-diagonal weights), batched over TB:
    # one pair of matmuls + one sigmoid per grid step.
    v = jnp.concatenate([mean, std], axis=1)            # (TB, 2C)
    h = jnp.dot(v, w1_ref[...], preferred_element_type=jnp.float32) + b1_ref[...]
    h = jnp.maximum(h, 0.0)
    s = jnp.dot(h, w2_ref[...], preferred_element_type=jnp.float32) + b2_ref[...]
    s = jax.nn.sigmoid(s)                                # (TB, 2C) = [att_avg|att_std]
    att = (s[:, :c] + s[:, c:]) * 0.5                    # (TB, C)

    o_ref[...] = att[:, :, None] * x                     # lane-broadcast over HW


def _att_two_pass_kernel(x_ref, w1_ref, b1_ref, w2_ref, b2_ref, o_ref,
                         s1_ref, s2_ref, att_ref, *, hw_true, n_hw):
    """HW-tiled fallback: pass 1 (k < n_hw) accumulates stats, pass 2 writes."""
    k = pl.program_id(1)

    @pl.when(k == 0)
    def _init():
        s1_ref[...] = jnp.zeros_like(s1_ref)
        s2_ref[...] = jnp.zeros_like(s2_ref)

    @pl.when(k < n_hw)
    def _accumulate():
        x = x_ref[...]                                   # (1, C, THW)
        s1_ref[...] += jnp.sum(x, axis=2)
        s2_ref[...] += jnp.sum(x * x, axis=2)            # zeros in padding are harmless

    @pl.when(k == n_hw)
    def _mlp():
        c = att_ref.shape[1]
        inv_hw = 1.0 / float(hw_true)
        mean = s1_ref[...] * inv_hw
        # TODO(synk): E[x^2]-mean^2 is cancellation-prone for large-mean
        # activations; a third streaming pass (shifted/centered accumulation)
        # would match the reference two-pass variance bit-for-bit.
        var = jnp.maximum(s2_ref[...] * inv_hw - mean * mean, 0.0)
        std = jnp.sqrt(var)
        v = jnp.concatenate([mean, std], axis=1)         # (1, 2C)
        h = jnp.dot(v, w1_ref[...], preferred_element_type=jnp.float32) + b1_ref[...]
        h = jnp.maximum(h, 0.0)
        s = jnp.dot(h, w2_ref[...], preferred_element_type=jnp.float32) + b2_ref[...]
        s = jax.nn.sigmoid(s)
        att_ref[...] = (s[:, :c] + s[:, c:]) * 0.5       # (1, C)

    @pl.when(k >= n_hw)
    def _apply():
        o_ref[...] = att_ref[...][:, :, None] * x_ref[...]


# ----------------------------------------------------------------------------
# Wrapper
# ----------------------------------------------------------------------------
def prepare_merged_params(params):
    """Fold the avg/std branch 1x1-conv MLPs into one block-diagonal MLP.

    Call ONCE when parameters are loaded (hoisted out of the per-forward path).
    Row-vector convention: att = sigmoid(relu([mean|std] @ W1 + b1) @ W2 + b2).
    """
    c, cr = params["w1_avg"].shape
    w1 = jnp.zeros((2 * c, 2 * cr), jnp.float32)
    w1 = w1.at[:c, :cr].set(params["w1_avg"]).at[c:, cr:].set(params["w1_std"])
    b1 = jnp.concatenate([params["b1_avg"], params["b1_std"]]).reshape(1, 2 * cr)
    w2 = jnp.zeros((2 * cr, 2 * c), jnp.float32)
    w2 = w2.at[:cr, :c].set(params["w2_avg"]).at[cr:, c:].set(params["w2_std"])
    b2 = jnp.concatenate([params["b2_avg"], params["b2_std"]]).reshape(1, 2 * c)
    return {"w1": w1, "b1": b1, "w2": w2, "b2": b2}


def _vmem_capacity_bytes():
    try:
        cap = int(pltpu.get_tpu_info().vmem_capacity_bytes)
        if cap > 0:
            return cap
    except Exception:
        pass
    return 64 << 20      # conservative floor — valid on every generation (v7x)


def _choose_batch_tile(batch, per_batch_bytes, budget_bytes):
    tb = max(1, min(batch, budget_bytes // max(per_batch_bytes, 1)))
    while batch % tb:
        tb -= 1
    # Keep at least two grid steps so both v7x TensorCores get work.
    if batch >= 2 and batch // tb < 2:
        tb = max(d for d in range(1, batch // 2 + 1) if batch % d == 0)
    return tb


def direct_aware_att(x_nchw, params=None, *, merged=None,
                     max_block_bytes=None, donate_x=False):
    """x_nchw: (B, C, H, W) float32.

    params: per-branch 1x1-conv weights w1_*: (C, Cr), b1_*: (Cr,),
            w2_*: (Cr, C), b2_*: (C,). Pass `merged=prepare_merged_params(params)`
            to hoist the weight merge out of the hot path.
    donate_x=True aliases x's HBM buffer with the output (only if the caller
    donates x); max_block_bytes overrides the per-grid-step block budget.
    """
    B, C, H, W = x_nchw.shape
    HW = H * W
    if merged is None:
        merged = prepare_merged_params(params)
    w1, b1, w2, b2 = merged["w1"], merged["b1"], merged["w2"], merged["b2"]

    # NCHW -> (B, C, HW): pure reshape (no transpose).  Pad the spatial axis
    # to a lane-dense multiple of 128 when needed; zero padding is harmless
    # (sums unchanged, padded lanes masked in the variance, att * 0 = 0).
    x = x_nchw.reshape(B, C, HW).astype(jnp.float32)
    HW_pad = -(-HW // 128) * 128
    if HW_pad != HW:
        x = jnp.pad(x, ((0, 0), (0, 0), (0, HW_pad - HW)))

    weight_bytes = 4 * (w1.size + b1.size + w2.size + b2.size)
    vmem_cap = max(_vmem_capacity_bytes() - (8 << 20), 24 << 20)   # headroom
    # ~2 MiB per block keeps each grid step well above the ~0.35 us fixed
    # pipeline overhead while staying tiny next to VMEM.
    block_budget = min(max_block_bytes or (2 << 20),
                       (vmem_cap - 2 * weight_bytes - (2 << 20)) // 4)
    per_batch_bytes = C * HW_pad * 4
    io_aliases = {0: 0} if donate_x else {}

    if per_batch_bytes <= block_budget:
        # --- Path A: whole-spatial block, batch-tiled grid (common case) -----
        TB = _choose_batch_tile(B, per_batch_bytes, block_budget)
        blk = (TB, C, HW_pad)
        vmem_need = 4 * TB * per_batch_bytes + 2 * weight_bytes + (2 << 20)
        w_specs = [pl.BlockSpec(a.shape, lambda i: (0, 0))
                   for a in (w1, b1, w2, b2)]
        cost = pl.CostEstimate(
            flops=int(6 * B * C * HW_pad + 16 * B * C * (w1.shape[1] // 2)),
            transcendentals=int(3 * B * C),
            bytes_accessed=int(2 * B * C * HW_pad * 4))
        out = pl.pallas_call(
            functools.partial(_att_single_pass_kernel, hw_true=HW),
            out_shape=jax.ShapeDtypeStruct((B, C, HW_pad), jnp.float32),
            grid_spec=pltpu.PrefetchScalarGridSpec(
                num_scalar_prefetch=0,
                grid=(B // TB,),
                in_specs=[pl.BlockSpec(blk, lambda i: (i, 0, 0))] + w_specs,
                out_specs=pl.BlockSpec(blk, lambda i: (i, 0, 0)),
            ),
            compiler_params=pltpu.CompilerParams(
                dimension_semantics=("parallel",),
                vmem_limit_bytes=int(min(max(vmem_need, 32 << 20), vmem_cap)),
            ),
            cost_estimate=cost,
            input_output_aliases=io_aliases,
        )(x, w1, b1, w2, b2)
    else:
        # --- Path B: HW-tiled two-pass (per-batch block too big for VMEM) ----
        THW = max(128, (block_budget // (C * 4)) // 128 * 128)
        THW = min(THW, HW_pad)
        HW_pad = -(-HW_pad // THW) * THW
        if HW_pad != x.shape[2]:
            x = jnp.pad(x, ((0, 0), (0, 0), (0, HW_pad - x.shape[2])))
        n_hw = HW_pad // THW
        blk = (1, C, THW)
        vmem_need = 4 * C * THW * 4 + 2 * weight_bytes + (2 << 20)
        w_specs = [pl.BlockSpec(a.shape, lambda i, k: (0, 0))
                   for a in (w1, b1, w2, b2)]
        cost = pl.CostEstimate(
            flops=int(7 * B * C * HW_pad),
            transcendentals=int(3 * B * C),
            bytes_accessed=int(3 * B * C * HW_pad * 4))   # 2 reads + 1 write
        out = pl.pallas_call(
            functools.partial(_att_two_pass_kernel, hw_true=HW, n_hw=n_hw),
            out_shape=jax.ShapeDtypeStruct((B, C, HW_pad), jnp.float32),
            grid_spec=pltpu.PrefetchScalarGridSpec(
                num_scalar_prefetch=0,
                grid=(B, 2 * n_hw),
                in_specs=[pl.BlockSpec(blk, lambda i, k: (i, 0, k % n_hw))]
                + w_specs,
                out_specs=pl.BlockSpec(
                    blk, lambda i, k: (i, 0, jnp.maximum(k - n_hw, 0))),
                scratch_shapes=[pltpu.VMEM((1, C), jnp.float32)] * 3,
            ),
            compiler_params=pltpu.CompilerParams(
                dimension_semantics=("parallel", "arbitrary"),
                vmem_limit_bytes=int(min(max(vmem_need, 32 << 20), vmem_cap)),
            ),
            cost_estimate=cost,
            input_output_aliases=io_aliases,
        )(x, w1, b1, w2, b2)

    if HW_pad != HW:
        out = out[:, :, :HW]
    return out.reshape(B, C, H, W)


# ----------------------------------------------------------------------------
# Pure-JAX reference (mirrors the PyTorch forward, biased variance)
# ----------------------------------------------------------------------------
def _reference(x_nchw, params):
    mean = jnp.mean(x_nchw, axis=(2, 3), keepdims=True)
    var = jnp.mean((x_nchw - mean) ** 2, axis=(2, 3), keepdims=True)
    std = jnp.sqrt(var)

    def mlp(v, w1, b1, w2, b2):
        v2 = v[:, :, 0, 0]
        h = jnp.maximum(v2 @ w1 + b1, 0.0)
        o = jax.nn.sigmoid(h @ w2 + b2)
        return o[:, :, None, None]

    att = (mlp(mean, params["w1_avg"], params["b1_avg"],
               params["w2_avg"], params["b2_avg"])
           + mlp(std, params["w1_std"], params["b1_std"],
                 params["w2_std"], params["b2_std"])) / 2.0
    return att * x_nchw


if __name__ == "__main__":
    B, C, H, W = 2, 32, 16, 16
    reduction = 4
    Cr = C // reduction

    key = jax.random.PRNGKey(0)
    keys = jax.random.split(key, 10)
    x = jax.random.normal(keys[0], (B, C, H, W), dtype=jnp.float32)
    params = {
        "w1_avg": jax.random.normal(keys[1], (C, Cr), jnp.float32) * 0.1,
        "b1_avg": jax.random.normal(keys[2], (Cr,), jnp.float32) * 0.1,
        "w2_avg": jax.random.normal(keys[3], (Cr, C), jnp.float32) * 0.1,
        "b2_avg": jax.random.normal(keys[4], (C,), jnp.float32) * 0.1,
        "w1_std": jax.random.normal(keys[5], (C, Cr), jnp.float32) * 0.1,
        "b1_std": jax.random.normal(keys[6], (Cr,), jnp.float32) * 0.1,
        "w2_std": jax.random.normal(keys[7], (Cr, C), jnp.float32) * 0.1,
        "b2_std": jax.random.normal(keys[8], (C,), jnp.float32) * 0.1,
    }
    merged = prepare_merged_params(params)     # weight merge hoisted (done once)

    ref = _reference(x, params)                # compute references first

    # Path A: whole-spatial block, batch-tiled grid.
    out_a = jax.block_until_ready(direct_aware_att(x, merged=merged))
    assert out_a.shape == (B, C, H, W)
    err_a = float(jnp.max(jnp.abs(out_a - ref)))
    assert err_a < 1e-4, f"single-pass path mismatch: max abs err = {err_a}"

    # Path B: HW-tiled two-pass fallback, forced via a tiny block budget so the
    # large-H*W / v7x path is exercised even at these small test shapes.
    out_b = jax.block_until_ready(
        direct_aware_att(x, merged=merged, max_block_bytes=16 * 1024))
    err_b = float(jnp.max(jnp.abs(out_b - ref)))
    assert err_b < 1e-4, f"two-pass path mismatch: max abs err = {err_b}"

    # Non-multiple-of-128 spatial size exercises zero-pad + masked variance.
    x2 = jax.random.normal(keys[9], (B, C, 10, 10), dtype=jnp.float32)
    ref2 = _reference(x2, params)
    out_c = jax.block_until_ready(direct_aware_att(x2, merged=merged))
    err_c = float(jnp.max(jnp.abs(out_c - ref2)))
    assert err_c < 1e-4, f"padded path mismatch: max abs err = {err_c}"

    print("KERNEL_OK")
</pallas_src>

<mosaic_0001>
module attributes {stable_mosaic.version = 11 : i64} {
  func.func @_att_single_pass_kernel(%arg0: i32, %arg1: memref<1x32x256xf32, #tpu.memory_space<vmem>>, %arg2: memref<64x16xf32, #tpu.memory_space<vmem>>, %arg3: memref<1x16xf32, #tpu.memory_space<vmem>>, %arg4: memref<16x64xf32, #tpu.memory_space<vmem>>, %arg5: memref<1x64xf32, #tpu.memory_space<vmem>>, %arg6: memref<1x32x256xf32, #tpu.memory_space<vmem>>) attributes {dimension_semantics = [#tpu.dimension_semantics<parallel>], iteration_bounds = array<i64: 2>, scalar_prefetch = 0 : i64, scratch_operands = 0 : i64, tpu.core_type = #tpu.core_type<tc>, window_params = [{transform_indices = @transform_0, window_bounds = array<i64: 1, 32, 256>}, {pipeline_mode = #tpu.pipeline_mode<synchronous>, transform_indices = @transform_1, window_bounds = array<i64: 64, 16>}, {pipeline_mode = #tpu.pipeline_mode<synchronous>, transform_indices = @transform_2, window_bounds = array<i64: 1, 16>}, {pipeline_mode = #tpu.pipeline_mode<synchronous>, transform_indices = @transform_3, window_bounds = array<i64: 16, 64>}, {pipeline_mode = #tpu.pipeline_mode<synchronous>, transform_indices = @transform_4, window_bounds = array<i64: 1, 64>}, {transform_indices = @transform_5, window_bounds = array<i64: 1, 32, 256>}]} {
    %c0 = arith.constant 0 : index
    %c0_0 = arith.constant 0 : index
    %c0_1 = arith.constant 0 : index
    %0 = vector.load %arg1[%c0, %c0_0, %c0_1] : memref<1x32x256xf32, #tpu.memory_space<vmem>>, vector<1x32x256xf32>
    %cst = arith.constant dense<0.000000e+00> : vector<1x32xf32>
    %1 = vector.multi_reduction <add>, %0, %cst [2] : vector<1x32x256xf32> to vector<1x32xf32>
    %cst_2 = arith.constant 3.906250e-03 : f32
    %2 = vector.broadcast %cst_2 : f32 to vector<1x32xf32>
    %3 = arith.mulf %1, %2 : vector<1x32xf32>
    %4 = vector.shape_cast %3 : vector<1x32xf32> to vector<1x32x1xf32>
    %5 = vector.broadcast %4 : vector<1x32x1xf32> to vector<1x32x256xf32>
    %6 = arith.subf %0, %5 : vector<1x32x256xf32>
    %7 = arith.mulf %6, %6 : vector<1x32x256xf32>
    %cst_3 = arith.constant dense<0.000000e+00> : vector<1x32xf32>
    %8 = vector.multi_reduction <add>, %7, %cst_3 [2] : vector<1x32x256xf32> to vector<1x32xf32>
    %cst_4 = arith.constant 3.906250e-03 : f32
    %9 = vector.broadcast %cst_4 : f32 to vector<1x32xf32>
    %10 = arith.mulf %8, %9 : vector<1x32xf32>
    %11 = math.sqrt %10 : vector<1x32xf32>
    %12 = tpu.concatenate %3, %11 in 1 : vector<1x32xf32>, vector<1x32xf32> -> vector<1x64xf32>
    %c0_5 = arith.constant 0 : index
    %c0_6 = arith.constant 0 : index
    %13 = vector.load %arg2[%c0_5, %c0_6] : memref<64x16xf32, #tpu.memory_space<vmem>>, vector<64x16xf32>
    %cst_7 = arith.constant dense<0.000000e+00> : vector<1x16xf32>
    %14 = tpu.matmul %12, %13, %cst_7 {dimension_numbers = #tpu.dot_dimension_numbers<[1], [0], [0], [1], [0, 0, 1, 1], [], []>} : vector<1x64xf32>, vector<64x16xf32>, vector<1x16xf32> -> vector<1x16xf32>
    %c0_8 = arith.constant 0 : index
    %c0_9 = arith.constant 0 : index
    %15 = vector.load %arg3[%c0_8, %c0_9] : memref<1x16xf32, #tpu.memory_space<vmem>>, vector<1x16xf32>
    %16 = arith.addf %14, %15 : vector<1x16xf32>
    %cst_10 = arith.constant 0.000000e+00 : f32
    %17 = vector.broadcast %cst_10 : f32 to vector<1x16xf32>
    %18 = arith.maximumf %16, %17 : vector<1x16xf32>
    %c0_11 = arith.constant 0 : index
    %c0_12 = arith.constant 0 : index
    %19 = vector.load %arg4[%c0_11, %c0_12] : memref<16x64xf32, #tpu.memory_space<vmem>>, vector<16x64xf32>
    %cst_13 = arith.constant dense<0.000000e+00> : vector<1x64xf32>
    %20 = tpu.matmul %18, %19, %cst_13 {dimension_numbers = #tpu.dot_dimension_numbers<[1], [0], [0], [1], [0, 0, 1, 1], [], []>} : vector<1x16xf32>, vector<16x64xf32>, vector<1x64xf32> -> vector<1x64xf32>
    %c0_14 = arith.constant 0 : index
    %c0_15 = arith.constant 0 : index
    %21 = vector.load %arg5[%c0_14, %c0_15] : memref<1x64xf32, #tpu.memory_space<vmem>>, vector<1x64xf32>
    %22 = arith.addf %20, %21 : vector<1x64xf32>
    %23 = arith.negf %22 : vector<1x64xf32>
    %24 = math.exp %23 : vector<1x64xf32>
    %cst_16 = arith.constant 1.000000e+00 : f32
    %25 = vector.broadcast %cst_16 : f32 to vector<1x64xf32>
    %26 = arith.addf %25, %24 : vector<1x64xf32>
    %27 = arith.divf %25, %26 : vector<1x64xf32>
    %28 = vector.extract_strided_slice %27 {offsets = [0, 0], sizes = [1, 32], strides = [1, 1]} : vector<1x64xf32> to vector<1x32xf32>
    %29 = vector.extract_strided_slice %27 {offsets = [0, 32], sizes = [1, 32], strides = [1, 1]} : vector<1x64xf32> to vector<1x32xf32>
    %30 = arith.addf %28, %29 : vector<1x32xf32>
    %cst_17 = arith.constant 5.000000e-01 : f32
    %31 = vector.broadcast %cst_17 : f32 to vector<1x32xf32>
    %32 = arith.mulf %30, %31 : vector<1x32xf32>
    %33 = vector.shape_cast %32 : vector<1x32xf32> to vector<1x32x1xf32>
    %34 = vector.broadcast %33 : vector<1x32x1xf32> to vector<1x32x256xf32>
    %35 = arith.mulf %34, %0 : vector<1x32x256xf32>
    %c0_18 = arith.constant 0 : index
    %c0_19 = arith.constant 0 : index
    %c0_20 = arith.constant 0 : index
    %36 = vector.load %arg6[%c0_18, %c0_19, %c0_20] : memref<1x32x256xf32, #tpu.memory_space<vmem>>, vector<1x32x256xf32>
    tpu.vector_store %arg6[%c0_18, %c0_19, %c0_20], %35 {strides = array<i32>} : memref<1x32x256xf32, #tpu.memory_space<vmem>>, vector<1x32x256xf32>,
    return
  }
  func.func @transform_0(%arg0: i32) -> (i32, i32, i32) {
    %c0_i32 = arith.constant 0 : i32
    %c0_i32_0 = arith.constant 0 : i32
    %c0_i32_1 = arith.constant 0 : i32
    return %arg0, %c0_i32, %c0_i32_0 : i32, i32, i32
  }
  func.func @transform_1(%arg0: i32) -> (i32, i32) {
    %c0_i32 = arith.constant 0 : i32
    %c0_i32_0 = arith.constant 0 : i32
    %c0_i32_1 = arith.constant 0 : i32
    return %c0_i32, %c0_i32_0 : i32, i32
  }
  func.func @transform_2(%arg0: i32) -> (i32, i32) {
    %c0_i32 = arith.constant 0 : i32
    %c0_i32_0 = arith.constant 0 : i32
    %c0_i32_1 = arith.constant 0 : i32
    return %c0_i32, %c0_i32_0 : i32, i32
  }
  func.func @transform_3(%arg0: i32) -> (i32, i32) {
    %c0_i32 = arith.constant 0 : i32
    %c0_i32_0 = arith.constant 0 : i32
    %c0_i32_1 = arith.constant 0 : i32
    return %c0_i32, %c0_i32_0 : i32, i32
  }
  func.func @transform_4(%arg0: i32) -> (i32, i32) {
    %c0_i32 = arith.constant 0 : i32
    %c0_i32_0 = arith.constant 0 : i32
    %c0_i32_1 = arith.constant 0 : i32
    return %c0_i32, %c0_i32_0 : i32, i32
  }
  func.func @transform_5(%arg0: i32) -> (i32, i32, i32) {
    %c0_i32 = arith.constant 0 : i32
    %c0_i32_0 = arith.constant 0 : i32
    %c0_i32_1 = arith.constant 0 : i32
    return %arg0, %c0_i32, %c0_i32_0 : i32, i32, i32
  }
}

</mosaic_0001>

<bundles_post_ra>
// kernel: tpu_custom_call.1
= control target key start
LH: loop header
LB: loop body
LE: loop exit
PB: predicated region body
PF: predicated region fallthrough
CT: control target
= control target key end

     0   :  { %10 = vsyncpa [#allocation3], 0  ;;  %s1232_s0 = inlined_call_operand.hbm [shape: f32[2,32,256], index: 0, kind: input, shape index: {}]   ;;  %s1233_s1 = inlined_call_operand.vmem [shape: f32[64,16], index: 1, kind: input, shape index: {}]   ;;  %s1234_s2 = inlined_call_operand.vmem [shape: f32[1,16], index: 2, kind: input, shape index: {}]   ;;  %s1235_s3 = inlined_call_operand.vmem [shape: f32[16,64], index: 3, kind: input, shape index: {}]   ;;  %s1236_s4 = inlined_call_operand.vmem [shape: f32[1,64], index: 4, kind: input, shape index: {}]   ;;  %s1237_s5 = inlined_call_operand.hbm [shape: f32[2,32,256], index: 5, kind: output, shape index: {}]  }
   0x1   :  { %12 = vsyncpa [#allocation3 + $0x1], 0 }
   0x2   :  { %13 = vsyncpa [#allocation4], 0 }
   0x3   :  { %15 = vsyncpa [#allocation4 + $0x1], 0  ;;  %s963_s18 = smov 0   ;;  %s965_s19 = smov 0  }
   0x4   :  { %s967_s20 = smov 0   ;;  %s969_s21 = smov 0  }
   0x5 LB: > { %s984_s22 = sadd.s32 4294967295, %s921_s21   ;;  %s687_s23 = sadd.s32 4294967294, %s921_s21   ;;  %s921_s21 = sphi %s969_s21, %s1250_s21   ;;  %s917_s20 = sphi %s967_s20, %s1249_s20   ;;  %s913_s19 = sphi %s965_s19, %s1248_s19   ;;  %s909_s18 = sphi %s963_s18, %s1247_s18  }
   0x6   : > { %s988_s24 = sadd.s32 1, %s921_s21   ;;  %s28_s25 = sadd.s32 1, %s917_s20 }
   0x7   : > { %s25_s26 = ssub.s32 %s921_s21, %s988_s24  ;;  %p35_p0 = scmp.ne.s32.totalorder %s917_s20, %s913_s19 }
   0x8   : > { %p26_p1 = scmp.eq.s32.totalorder %s25_s26, 0  ;;  %p36_p2 = scmp.eq.s32.totalorder %s921_s21, 0 }
   0x9   : > { %p41_p3 = scmp.ne.s32.totalorder %s913_s19, %s909_s18  ;;  %p42_p4 = scmp.eq.s32.totalorder %s984_s22, 0 }
   0xa   : > { %s1000_s27 = scalar_select %p26_p1, %s917_s20, %s28_s25  }
   0xb   : > { %p1002_p5 = por %p36_p2, %p35_p0  ;;  %p1006_p6 = por %p42_p4, %p41_p3 }
   0xc   : > { %p149_p7 = scmp.eq.s32.totalorder %s984_s22, 1  ;;  %p155_p8 = scmp.eq.s32.totalorder %s687_s23, 1 }
   0xd   : > { %p771_p10 = scmp.lt.s32.totalorder %s921_s21, 2  ;;  %s187_s7 = sand.u32 1, %s917_s20  }
   0xe   : > { %p1013_p11 = por %p149_p7, %p35_p0  ;;  %p1017_p12 = por %p155_p8, %p41_p3 }
   0xf   : > { %s704_s8 = sshll.u32 %s921_s21, 10  ;;  %s690_s9 = sshll.u32 %s187_s7, 6 }
  0x10   : > { %s1241_s30 = scalar_select %p1013_p11, 1, 0 }
  0x11   : > { %s1242_s6 = scalar_select %p1017_p12, 1, 0 }
  0x12   : > { %s1026_s12 = scalar_lea.hbm %s1232_s0, %s704_s8  ;;  %s191_s13 = scalar_lea.vmem [#allocation2], %s690_s9 }
  0x13   : > { %s198_s14 = sshll.u32 %s191_s13, 4  ;;  %p1030_p13 = pnand %p771_p10, %p1002_p5  ;;  %s1034_s14 = int_to_ptr.vmem [resolvable:$true] %s198_s14 }
  0x14   : > { %s1036_s16 = scalar_lea.sflag [#allocation3], %s187_s7  ;;  %s825_s17 = scalar_lea.hbm %s1026_s12, 1024 }
  0x15   : > { %p826_p0 = scmp.ne.s32.totalorder %s1026_s12, %s825_s17  ;;  %p827_p1 = pneg %p1030_p13 }
  0x16   : > { %s830_s26 = scalar_lea.hbm %s1232_s0, 2048  ;;  %p831_p4 = scmp.lt.u32.totalorder %s1026_s12, %s1232_s0 }
  0x17   : > { %p828_p2 = pnand %p827_p1, %p826_p0  ;;  %p832_p5 = scmp.lt.u32.totalorder %s830_s26, %s825_s17 }
  0x18   : > { %p834_p8 = scmp.lt.u32.totalorder %s825_s17, %s1026_s12 }
  0x19   : > { %p829_p3 = pneg %p828_p2  ;;  %p833_p7 = por %p832_p5, %p831_p4 }
  0x1b   : > { %p835_p10 = por %p834_p8, %p833_p7 }
  0x1d   : > { %p836_p9 = pnand %p835_p10, %p829_p3 }
  0x1f   : > { %839 = shalt.err (!%p836_p9)
}
  0x20   : > { %s840_s7 = scalar_lea.vmem %s1034_s14, 1024  ;;  %s923_s9 = smov [#allocation2]  }
  0x21   : > { %p841_p0 = scmp.ne.s32.totalorder %s1034_s14, %s840_s7  ;;  %s845_s10 = sshll.u32 %s923_s9, 4  ;;  %s846_s10 = int_to_ptr.vmem [resolvable:$false] %s845_s10 }
  0x22   : > { %s847_s11 = scalar_lea.vmem %s846_s10, 2048  ;;  %p848_p11 = scmp.lt.s32.totalorder %s1034_s14, %s846_s10 }
  0x23   : > { %p843_p2 = pnand %p841_p0, %p827_p1  ;;  %p849_p4 = scmp.lt.s32.totalorder %s847_s11, %s840_s7 }
  0x25   : > { %p844_p12 = pneg %p843_p2  ;;  %p850_p5 = por %p849_p4, %p848_p11 }
  0x27   : > { %p851_p7 = pnand %p850_p5, %p844_p12 }
  0x29   : > { %854 = shalt.err (!%p851_p7)
}
  0x2a   : > { %s924_s13 = smov 256   ;;  %s925_s17 = smov 16  }
  0x2b   : > { %766 = dma.hbm_to_vmem [thread:$0]  (!%p1030_p13), %s1026_s12, 1024, %s1034_s14, %s1036_s16, %s924_s13, %s924_s13, %s925_s17  }
  0x2c   : > { %p693_p9 = scmp.ge.s32.totalorder %s921_s21, 1  ;;  %p206_p1 = scmp.lt.s32.totalorder %s921_s21, 3 }
  0x2e   : > { %p207_p3 = pnand %p693_p9, %p206_p1 }
  0x2f   : > { %s1067_s23 = sand.u32 (!%p207_p3), 1, %s913_s19  }
  0x30   : > { %210 = sbr.rel (%p207_p3) target bundleno = 1097 (0x449), region = 40  ;;  %s694_s25 = sshll.u32 (!%p207_p3), %s1067_s23, 6 }
  0x31   : > { %s213_s26 = scalar_lea.sflag (!%p207_p3), [#allocation3], %s1067_s23  ;;  %s216_s28 = scalar_lea.vmem (!%p207_p3), [#allocation2], %s694_s25 }
  0x37   : > { %900 = dma.done.wait (%p1006_p6), %s213_s26, 1024  }
  0x38   : > { %902 = vsyncadd (%p1006_p6), %s213_s26, 4294966272  ;;  %v1077_v0 = vld [vmem:[%s216_s28] sm:$0xff]  ;;  %v1079_v1 = vld [vmem:[%s216_s28 + $0x8] sm:$0xff]  ;;  %v331_v12 = vlaneseq  ;;  %vm342_vm0 = vcmask 130112   ;;  %vm349_vm1 = vcmask 195712   ;;  %vm356_vm2 = vcmask 261312  }
  0x39   : > { %v1081_v2 = vld [vmem:[%s216_s28 + $0x20] sm:$0xff]  ;;  %v251_v3 = vadd.f32 %v1079_v1, %v1077_v0  ;;  %v1085_v4 = vld [vmem:[%s216_s28 + $0x28] sm:$0xff]  ;;  %v1087_v5 = vld [vmem:[%s216_s28 + $0x10] sm:$0xff]  ;;  %v926_v60 = vmov 0.0|0.0   ;;  %vm927_vm3 = vmmov 0   ;;  %vm373_vm6 = vcmask 392512  }
  0x3a   : > { %v1089_v6 = vld [vmem:[%s216_s28 + $0x18] sm:$0xff]  ;;  %v257_v7 = vadd.f32 %v1085_v4, %v1081_v2  ;;  %v1093_v8 = vld [vmem:[%s216_s28 + $0x30] sm:$0xff]  ;;  %v1101_v13 = vand.u32 127, %v331_v12  ;;  %v1103_v14 = vshrl.u32 %v331_v12, 7  ;;  %v392_v57 = vld [vmem:[%s1233_s1] sm:$0xff]  ;;  %744 = vmatprep.subr.bf16.mxu0 %v926_v60  ;;  %756 = vmatprep.subr.bf16.mxu1 %v926_v60  ;;  %vm380_vm13 = vcmask 458112  }
  0x3b   : > { %v1095_v9 = vld [vmem:[%s216_s28 + $0x38] sm:$0xff]  ;;  %252 = vadd.xlane.f32.xlu0 %v251_v3  ;;  %v254_v10 = vadd.f32 %v1089_v6, %v1087_v5  ;;  %v393_v58 = vld [vmem:[%s1233_s1 + $0x8] sm:$0xff]  ;;  %v394_v61 = vld [vmem:[%s1233_s1 + $0x10] sm:$0xff]  ;;  %vm387_vm14 = vcmask 523712   ;;  %vm390_vm15 = vcmask 261120   ;;  %s929_s13 = smov 96  }
  0x3c   : > { %258 = vadd.xlane.f32.xlu1 %v257_v7  ;;  %v260_v11 = vadd.f32 %v1095_v9, %v1093_v8  ;;  %v344_v15 = vadd.s32 4294967280, %v1101_v13  ;;  %v337_v16 = vadd.s32 4294967288, %v1101_v13  ;;  %v351_v18 = vadd.s32 4294967272, %v1101_v13  ;;  %v395_v62 = vld [vmem:[%s1233_s1 + $0x18] sm:$0xff]  ;;  %v396_v3 = vld [vmem:[%s1233_s1 + $0x20] sm:$0xff]  ;;  %v397_v7 = vld [vmem:[%s1233_s1 + $0x28] sm:$0xff] }
  0x3d   : > { %v335_v19 = vsub.s32 %v1101_v13, %v1103_v14  ;;  %v745_v59 = vpack.c.bf16 %v393_v58, %v392_v57  ;;  %v748_v63 = vpack.c.bf16 %v395_v62, %v394_v61  ;;  %v398_v12 = vld [vmem:[%s1233_s1 + $0x30] sm:$0xff]  ;;  %v476_v61 = vld [vmem:[%s1235_s3] sm:$0xff]  ;;  %v477_v62 = vld [vmem:[%s1235_s3 + $0x8] sm:$0xff]  ;;  %s242_s17 = scalar_lea.vmem [#allocation5], %s694_s25  ;;  %s705_s28 = sshll.u32 %s984_s22, 10 }
  0x3e   : > { %v347_v22 = vsub.s32 %v344_v15, %v1103_v14  ;;  %v340_v24 = vsub.s32 %v337_v16, %v1103_v14  ;;  %v354_v28 = vsub.s32 %v351_v18, %v1103_v14  ;;  %v399_v15 = vld [vmem:[%s1233_s1 + $0x38] sm:$0xff]  ;;  %s614_s26 = sshll.u32 %s242_s17, 4  ;;  %s1186_s12 = scalar_lea.hbm %s1237_s5, %s705_s28  ;;  %s1181_s26 = int_to_ptr.vmem [resolvable:$true] %s614_s26 }
  0x3f   : > { %255 = vadd.xlane.f32.xlu0 %v254_v10  ;;  %746 = vmatpush3.bf16.msra.mxu0 %v745_v59  ;;  %v751_v10 = vpack.c.bf16 %v397_v7, %v396_v3  ;;  %v754_v16 = vpack.c.bf16 %v399_v15, %v398_v12  ;;  %v400_v3 = vld [vmem:[%s1234_s2] sm:$0x1]  ;;  %s601_s22 = scalar_lea.sflag [#allocation4], %s1067_s23  ;;  %s855_s14 = scalar_lea.vmem %s1181_s26, 1024 }
  0x40   : > { %261 = vadd.xlane.f32.xlu1 %v260_v11  ;;  %747 = vmatprep.subr.bf16.mxu0 %v926_v60  ;;  %v928_v11 = vmov 0.0   ;;  %v478_v12 = vld [vmem:[%s1236_s4] sm:$0x1]  ;;  %p856_p6 = scmp.ne.s32.totalorder %s1181_s26, %s855_s14  ;;  %p1244_p11 = scmp.ne.s32.totalorder %s1241_s30, 0 }
  0x41   : > { %734 = vmatprep.mubr.msk.f32.mxu0 %vm927_vm3, %v928_v11  ;;  %741 = vmatprep.mubr.msk.f32.mxu1 %vm927_vm3, %v928_v11  ;;  %s930_s15 = smov [#allocation5]  }
  0x42   : > { %p857_p12 = pnand %p856_p6, %p1244_p11  ;;  %s859_s16 = sshll.u32 %s930_s15, 4  ;;  %s860_s16 = int_to_ptr.vmem [resolvable:$false] %s859_s16 }
  0x43   : > { %749 = vmatpush3.bf16.msra.mxu0 %v748_v63  ;;  %v757_v63 = vpack.c.bf16 %v477_v62, %v476_v61  ;;  %s861_s8 = scalar_lea.vmem %s860_s16, 2048  ;;  %p862_p8 = scmp.lt.s32.totalorder %s1181_s26, %s860_s16 }
  0x44   : > { %750 = vmatprep.subr.bf16.mxu0 %v926_v60  ;;  %p858_p13 = pneg %p857_p12  ;;  %p863_p10 = scmp.lt.s32.totalorder %s861_s8, %s855_s14 }
  0x45   : > { %758 = vmatpush3.bf16.msra.mxu1 %v757_v63 }
  0x46   : > { %p864_p0 = por %p863_p10, %p862_p8 }
  0x47   : > { %752 = vmatpush3.bf16.msra.mxu0 %v751_v10 }
  0x48   : > { %753 = vmatprep.subr.bf16.mxu0 %v926_v60  ;;  %p865_p2 = pnand %p864_p0, %p858_p13 }
  0x4b   : > { %755 = vmatpush3.bf16.msra.mxu0 %v754_v16 }
  0xc8   : > { %v253_v17 = vpop.xlane.xlu0 %252 }
  0xc9   : > { %v263_v20 = vmul.f32 0.00390625, %v253_v17  ;;  %v259_v21 = vpop.xlane.xlu1 %258 }
  0xca   : > { %v265_v23 = vmul.f32 0.00390625, %v259_v21 }
  0xcb   : > { %v267_v25 = vsub.f32 %v1077_v0, %v263_v20  ;;  %v268_v26 = vsub.f32 %v1079_v1, %v263_v20  ;;  %v336_v31 = vrot.slane %v263_v20, %v335_v19 }
  0xcc   : > { %v256_v27 = vpop.xlane.xlu0 %255  ;;  %v271_v29 = vsub.f32 %v1081_v2, %v265_v23  ;;  %v272_v30 = vsub.f32 %v1085_v4, %v265_v23  ;;  %v348_v36 = vrot.slane %v265_v23, %v347_v22 }
  0xcd   : > { %v264_v32 = vmul.f32 0.00390625, %v256_v27  ;;  %v262_v33 = vpop.xlane.xlu1 %261  ;;  %v275_v34 = vmul.f32 %v267_v25, %v267_v25  ;;  %v276_v35 = vmul.f32 %v268_v26, %v268_v26  ;;  %v363_v26 = vadd.s32 4294967264, %v1101_v13 }
  0xce   : > { %v266_v37 = vmul.f32 0.00390625, %v262_v33  ;;  %v279_v38 = vmul.f32 %v271_v29, %v271_v29  ;;  %v280_v39 = vmul.f32 %v272_v30, %v272_v30  ;;  %v368_v27 = vadd.s32 4294967256, %v1101_v13 }
  0xcf   : > { %v341_v40 = vrot.slane %v264_v32, %v340_v24  ;;  %v283_v41 = vadd.f32 %v276_v35, %v275_v34  ;;  %v269_v42 = vsub.f32 %v1087_v5, %v264_v32  ;;  %v270_v43 = vsub.f32 %v1089_v6, %v264_v32 }
  0xd0   : > { %v355_v44 = vrot.slane %v266_v37, %v354_v28  ;;  %v273_v45 = vsub.f32 %v1093_v8, %v266_v37  ;;  %v274_v46 = vsub.f32 %v1095_v9, %v266_v37  ;;  %v289_v48 = vadd.f32 %v280_v39, %v279_v38 }
  0xd1   : > { %v343_v47 = vsel %vm342_vm0, %v341_v40, %v336_v31  ;;  %284 = vadd.xlane.f32.xlu0 %v283_v41  ;;  %v277_v49 = vmul.f32 %v269_v42, %v269_v42  ;;  %v278_v50 = vmul.f32 %v270_v43, %v270_v43  ;;  %v375_v29 = vadd.s32 4294967248, %v1101_v13 }
  0xd2   : > { %v281_v51 = vmul.f32 %v273_v45, %v273_v45  ;;  %v282_v52 = vmul.f32 %v274_v46, %v274_v46  ;;  %v350_v53 = vsel %vm349_vm1, %v348_v36, %v343_v47  ;;  %v366_v33 = vsub.s32 %v363_v26, %v1103_v14 }
  0xd3   : > { %v286_v54 = vadd.f32 %v278_v50, %v277_v49  ;;  %v1123_v55 = vsel %vm356_vm2, %v355_v44, %v350_v53  ;;  %v371_v34 = vsub.s32 %v368_v27, %v1103_v14  ;;  %v382_v35 = vadd.s32 4294967240, %v1101_v13 }
  0xd4   : > { %v292_v56 = vadd.f32 %v282_v52, %v281_v51  ;;  %v378_v38 = vsub.s32 %v375_v29, %v1103_v14  ;;  %vm401_vm0 = vcmask 523264   ;;  %vm479_vm1 = vcmask 130048  }
  0xd5   : > { %290 = vadd.xlane.f32.xlu0 %v289_v48  ;;  %287 = vadd.xlane.f32.xlu1 %v286_v54  ;;  %v385_v13 = vsub.s32 %v382_v35, %v1103_v14 }
  0xd9   : > { %293 = vadd.xlane.f32.xlu1 %v292_v56 }
 0x15e   : > { %v285_v17 = vpop.xlane.xlu0 %284 }
 0x15f   : > { %v295_v18 = vmul.f32 0.00390625, %v285_v17 }
 0x161   : > { %813 = vrsqrt.f32 %v295_v18  ;;  %vm301_vm4 = vcmp.eq.f32.partialorder %v295_v18, inf  ;;  %v304_v32 = vand.u32 2147483648, %v295_v18  ;;  %vm303_vm5 = vcmp.eq.f32.partialorder %v295_v18, 0.0 }
 0x162   : > { %v288_v19 = vpop.xlane.xlu1 %287  ;;  %v291_v20 = vpop.xlane.xlu0 %290 }
 0x163   : > { %v296_v21 = vmul.f32 0.00390625, %v288_v19  ;;  %v297_v22 = vmul.f32 0.00390625, %v291_v20 }
 0x165   : > { %815 = vrsqrt.f32 %v296_v21  ;;  %vm308_vm7 = vcmp.eq.f32.partialorder %v296_v21, inf  ;;  %v311_v39 = vand.u32 2147483648, %v296_v21  ;;  %vm310_vm8 = vcmp.eq.f32.partialorder %v296_v21, 0.0 }
 0x166   : > { %817 = vrsqrt.f32 %v297_v22  ;;  %v294_v23 = vpop.xlane.xlu1 %293  ;;  %vm315_vm9 = vcmp.eq.f32.partialorder %v297_v22, inf  ;;  %v318_v43 = vand.u32 2147483648, %v297_v22  ;;  %vm317_vm10 = vcmp.eq.f32.partialorder %v297_v22, 0.0 }
 0x167   : > { %v298_v24 = vmul.f32 0.00390625, %v294_v23  ;;  %v567_v23 = vsub.s32 0, %v1103_v14 }
 0x169   : > { %819 = vrsqrt.f32 %v298_v24  ;;  %vm322_vm11 = vcmp.eq.f32.partialorder %v298_v24, inf  ;;  %v325_v51 = vand.u32 2147483648, %v298_v24  ;;  %vm324_vm12 = vcmp.eq.f32.partialorder %v298_v24, 0.0 }
 0x16b   : > { %v814_v25 = vpop.eup %813 }
 0x16c   : > { %v300_v28 = vmul.f32 %v814_v25, %v295_v18 }
 0x16e   : > { %v302_v30 = vsel %vm301_vm4, %v295_v18, %v300_v28 }
 0x16f   : > { %v816_v31 = vpop.eup %815  ;;  %v305_v41 = vsel %vm303_vm5, %v304_v32, %v302_v30 }
 0x170   : > { %v818_v36 = vpop.eup %817  ;;  %v307_v37 = vmul.f32 %v816_v31, %v296_v21  ;;  %v367_v49 = vrot.slane %v305_v41, %v366_v33 }
 0x171   : > { %v314_v40 = vmul.f32 %v818_v36, %v297_v22 }
 0x172   : > { %v309_v42 = vsel %vm308_vm7, %v296_v21, %v307_v37 }
 0x173   : > { %v820_v44 = vpop.eup %819  ;;  %v312_v45 = vsel %vm310_vm8, %v311_v39, %v309_v42  ;;  %v316_v46 = vsel %vm315_vm9, %v297_v22, %v314_v40 }
 0x174   : > { %v319_v47 = vsel %vm317_vm10, %v318_v43, %v316_v46  ;;  %v321_v48 = vmul.f32 %v820_v44, %v298_v24  ;;  %v372_v50 = vrot.slane %v312_v45, %v371_v34 }
 0x175   : > { %v379_v52 = vrot.slane %v319_v47, %v378_v38 }
 0x176   : > { %v323_v53 = vsel %vm322_vm11, %v298_v24, %v321_v48  ;;  %v374_v54 = vsel %vm373_vm6, %v372_v50, %v367_v49 }
 0x177   : > { %v326_v56 = vsel %vm324_vm12, %v325_v51, %v323_v53  ;;  %v381_v58 = vsel %vm380_vm13, %v379_v52, %v374_v54 }
 0x178   : > { %v386_v57 = vrot.slane %v326_v56, %v385_v13 }
 0x17a   : > { %v388_v59 = vsel %vm387_vm14, %v386_v57, %v381_v58 }
 0x17b   : > { %v391_v60 = vsel %vm390_vm15, %v1123_v55, %v388_v59 }
 0x17c   : > { %735 = vmatmul.mubr.msk.f32.vlgmr.msra.gmra.mrb[0].mxu0 %vm401_vm0, %v391_v60 }
 0x24f   : > { %v471_v7 = vpop.f32.mrb[0].mxu0 }
 0x250   : > { %v472_v10 = vadd.f32 %v471_v7, %v400_v3  ;;  %v736_v11 = vpop.f32.mrb[1].mxu0 }
 0x252   : > { %v475_v55 = vmax.f32 %v472_v10, 0.0 }
 0x254   : > { %742 = vmatmul.mubr.msk.f32.vlgmr.msra.gmra.mrb[0].mxu1 %vm479_vm1, %v475_v55 }
 0x327   : > { %v549_v15 = vpop.f32.mrb[0].mxu1 }
 0x328   : > { %v550_v16 = vadd.f32 %v549_v15, %v478_v12  ;;  %v743_v17 = vpop.f32.mrb[1].mxu1 }
 0x32a   : > { %v698_v18 = vmul.f32 -1.442695, %v550_v16 }
 0x32c   : > { %821 = vpow2.f32 %v698_v18 }
 0x336   : > { %v822_v19 = vpop.eup %821 }
 0x337   : > { %v556_v20 = vadd.f32 1.0, %v822_v19 }
 0x339   : > { %823 = vrcp.f32 %v556_v20 }
 0x343   : > { %v824_v21 = vpop.eup %823 }
 0x344   : > { %560 = vrot.lane.b32.xlu0 %v824_v21, %s929_s13 }
 0x3b6   : > { %v561_v22 = vpop.permute.xlu0 %560 }
 0x3b7   : > { %v563_v24 = vadd.f32 %v824_v21, %v561_v22 }
 0x3b9   : > { %v564_v25 = vmul.f32 0.5, %v563_v24 }
 0x3bb   : > { %v568_v26 = vrot.slane %v564_v25, %v567_v23 }
 0x3bd   : > { %582 = vbcast.lane.b32.xlu0 %v568_v26, 280  ;;  %570 = vbcast.lane.b32.xlu1 %v568_v26, 256 }
 0x3c1   : > { %574 = vbcast.lane.b32.xlu1 %v568_v26, 264 }
 0x3c5   : > { %578 = vbcast.lane.b32.xlu1 %v568_v26, 272 }
 0x42f   : > { %v583_v27 = vpop.permute.xlu0 %582  ;;  %v571_v28 = vpop.permute.xlu1 %570 }
 0x430   : > { %v590_v29 = vmul.f32 %v583_v27, %v1093_v8  ;;  %v591_v30 = vmul.f32 %v583_v27, %v1095_v9  ;;  %v584_v31 = vmul.f32 %v571_v28, %v1077_v0  ;;  %v585_v32 = vmul.f32 %v571_v28, %v1079_v1 }
 0x432   : > { %598 = vst [vmem:[%s242_s17 + $0x30] sm:$0xff] %v590_v29  ;;  %599 = vst [vmem:[%s242_s17 + $0x38] sm:$0xff] %v591_v30 }
 0x433   : > { %592 = vst [vmem:[%s242_s17] sm:$0xff] %v584_v31  ;;  %593 = vst [vmem:[%s242_s17 + $0x8] sm:$0xff] %v585_v32  ;;  %v575_v14 = vpop.permute.xlu1 %574 }
 0x434   : > { %v586_v33 = vmul.f32 %v575_v14, %v1087_v5  ;;  %v587_v8 = vmul.f32 %v575_v14, %v1089_v6 }
 0x436   : > { %594 = vst [vmem:[%s242_s17 + $0x10] sm:$0xff] %v586_v33  ;;  %595 = vst [vmem:[%s242_s17 + $0x18] sm:$0xff] %v587_v8 }
 0x437   : > { %v579_v0 = vpop.permute.xlu1 %578 }
 0x438   : > { %v588_v1 = vmul.f32 %v579_v0, %v1081_v2  ;;  %v589_v5 = vmul.f32 %v579_v0, %v1085_v4 }
 0x43a   : > { %596 = vst [vmem:[%s242_s17 + $0x20] sm:$0xff] %v588_v1  ;;  %597 = vst [vmem:[%s242_s17 + $0x28] sm:$0xff] %v589_v5 }
 0x43b   : > { %868 = shalt.err (!%p865_p2)
}
 0x43c   : > { %s869_s7 = scalar_lea.hbm %s1186_s12, 1024  ;;  %s873_s11 = scalar_lea.hbm %s1237_s5, 2048 }
 0x43d   : > { %p870_p4 = scmp.ne.s32.totalorder %s1186_s12, %s869_s7  ;;  %p874_p9 = scmp.lt.u32.totalorder %s1186_s12, %s1237_s5 }
 0x43e   : > { %p875_p1 = scmp.lt.u32.totalorder %s873_s11, %s869_s7  ;;  %p877_p6 = scmp.lt.u32.totalorder %s869_s7, %s1186_s12 }
 0x43f   : > { %p871_p5 = pnand %p870_p4, %p1244_p11 }
 0x440   : > { %p876_p3 = por %p875_p1, %p874_p9 }
 0x441   : > { %p872_p7 = pneg %p871_p5 }
 0x442   : > { %p878_p12 = por %p877_p6, %p876_p3 }
 0x444   : > { %p879_p13 = pnand %p878_p12, %p872_p7 }
 0x446   : > { %882 = shalt.err (!%p879_p13)
}
 0x447   : > { %s931_s28 = smov 256   ;;  %s932_s25 = smov 16  }
 0x448   : > { %761 = dma.vmem_to_hbm [thread:$0]  (%p1244_p11), %s1181_s26, 1024, %s1186_s12, %s601_s22, %s931_s28, %s931_s28, %s932_s25  }
 0x449 PF: > { %s629_s29 = sand.u32 1, %s909_s18   ;;  %p1245_p8 = scmp.ne.s32.totalorder %s1242_s6, 0 }
 0x44a   : > { %p1246_p10 = scmp.ge.s32.totalorder %s921_s21, 2  ;;  %s630_s14 = scalar_lea.sflag [#allocation4], %s629_s29 }
 0x44c   : > { %p768_p0 = pnand %p1246_p10, %p1245_p8 }
 0x44e   : > { %904 = dma.done.wait (!%p768_p0), %s630_s14, 1024  }
 0x44f   : > { %906 = vsyncadd (!%p768_p0), %s630_s14, 4294966272  ;;  %p18_p2 = scmp.ge.s32.totalorder %s988_s24, 4   ;;  %s1247_s18 = smov %s913_s19 }
 0x450   : > { %s1248_s19 = smov %s917_s20  ;;  %s1249_s20 = smov %s1000_s27 }
 0x451   : > { %s1250_s21 = smov %s988_s24  ;;  %20 = sbr.rel (!%p18_p2) target bundleno = 5 (0x5), region = 85 }
 0x458   :  { %635 = vsyncpa [#allocation3], 1 }
 0x459   :  { %637 = vsyncpa [#allocation3 + $0x1], 1 }
 0x45a   :  { %638 = vsyncpa [#allocation4], 1 }
 0x45b   :  { %640 = vsyncpa [#allocation4 + $0x1], 1 }

</bundles_post_ra>
